<compile_context>
chip_gen: v7x
topology: tpu7x:2x2x1
jax: 0.10.0
libtpu: 0.0.40
codegen_flags: <defaults>
</compile_context>

<pallas_src>
import functools

import numpy as np
import jax
import jax.numpy as jnp
from jax import lax
from jax.experimental import pallas as pl
from jax.experimental.pallas import tpu as pltpu


# ------------------------------- small helpers ------------------------------- #

def _round_up(x, m):
    return ((x + m - 1) // m) * m


def _tile(dim, max_tile, quantum):
    """Largest multiple-of-`quantum` tile <= max_tile dividing dim, else dim."""
    if dim <= max_tile:
        return dim
    t = (max_tile // quantum) * quantum
    while t >= quantum:
        if dim % t == 0:
            return t
        t -= quantum
    return dim


# --------------------------- tiled linear (+ bias) --------------------------- #

def _linear_kernel(x_ref, w_ref, b_ref, o_ref, acc_ref):
    # y = x @ W + b, K-reduction along grid axis 2 with an f32 accumulator.
    @pl.when(pl.program_id(2) == 0)
    def _init():
        acc_ref[...] = jnp.zeros_like(acc_ref)

    acc_ref[...] += jnp.dot(x_ref[...], w_ref[...],
                            preferred_element_type=jnp.float32)

    @pl.when(pl.program_id(2) == pl.num_programs(2) - 1)
    def _store():
        o_ref[...] = (acc_ref[...] + b_ref[...]).astype(o_ref.dtype)


def linear(x2d, w, b, *, tm_max=512, tn_max=256, tk_max=512):
    """x2d: (M, K), w: (K, N), b: (N,) -> (M, N) = x2d @ w + b (tiled)."""
    M, K = x2d.shape
    N = w.shape[1]
    tm = _tile(M, tm_max, 8)
    tn = _tile(N, tn_max, 128)
    tk = _tile(K, tk_max, 128)
    grid = (M // tm, N // tn, K // tk)
    return pl.pallas_call(
        _linear_kernel,
        out_shape=jax.ShapeDtypeStruct((M, N), x2d.dtype),
        grid=grid,
        in_specs=[pl.BlockSpec((tm, tk), lambda i, j, k: (i, k)),
                  pl.BlockSpec((tk, tn), lambda i, j, k: (k, j)),
                  pl.BlockSpec((1, tn), lambda i, j, k: (0, j))],
        out_specs=pl.BlockSpec((tm, tn), lambda i, j, k: (i, j)),
        scratch_shapes=[pltpu.VMEM((tm, tn), jnp.float32)],
        compiler_params=pltpu.CompilerParams(
            dimension_semantics=("parallel", "parallel", "arbitrary")),
    )(x2d, w, b.reshape(1, N))


# --------------- output projection: reduce over heads in-kernel --------------- #

def _oproj_kernel(x_ref, w_ref, b_ref, o_ref, acc_ref):
    # out[m, :] = sum_h ctx[h, m, :] @ Wo[h] + bo   (heads = grid axis 2)
    @pl.when(pl.program_id(2) == 0)
    def _init():
        acc_ref[...] = jnp.zeros_like(acc_ref)

    acc_ref[...] += jnp.dot(x_ref[0], w_ref[0],
                            preferred_element_type=jnp.float32)

    @pl.when(pl.program_id(2) == pl.num_programs(2) - 1)
    def _store():
        o_ref[...] = (acc_ref[...] + b_ref[...]).astype(o_ref.dtype)


def output_projection(ctx_heads, wo, bo, *, tm_max=512, tn_max=256):
    """ctx_heads: (N, M, d) split-heads context; wo: (N*d, H); bo: (H,) -> (M, H).

    The head axis is the K-reduction grid axis, so no combine_heads transpose
    of the (B, L, H)-sized context is ever materialized.
    """
    N, M, d = ctx_heads.shape
    H = wo.shape[1]
    assert wo.shape[0] == N * d
    tm = _tile(M, tm_max, 8)
    tn = _tile(H, tn_max, 128)
    w3 = wo.reshape(N, d, H)    # wo rows are head-major -> free reshape per head
    return pl.pallas_call(
        _oproj_kernel,
        out_shape=jax.ShapeDtypeStruct((M, H), ctx_heads.dtype),
        grid=(M // tm, H // tn, N),
        in_specs=[pl.BlockSpec((1, tm, d), lambda i, j, h: (h, i, 0)),
                  pl.BlockSpec((1, d, tn), lambda i, j, h: (h, 0, j)),
                  pl.BlockSpec((1, tn), lambda i, j, h: (0, j))],
        out_specs=pl.BlockSpec((tm, tn), lambda i, j, h: (i, j)),
        scratch_shapes=[pltpu.VMEM((tm, tn), jnp.float32)],
        compiler_params=pltpu.CompilerParams(
            dimension_semantics=("parallel", "parallel", "arbitrary")),
    )(ctx_heads, w3, bo.reshape(1, H))


# ----------------------- fused relative attention kernel --------------------- #

def _rel_attn_kernel(*refs, scale, q_tile, kv_len, band_w, causal, has_bias,
                     mxu_dtype):
    if has_bias:
        q_ref, k_ref, v_ref, r_ref, u_ref, vb_ref, bias_ref, o_ref = refs
    else:
        q_ref, k_ref, v_ref, r_ref, u_ref, vb_ref, o_ref = refs
        bias_ref = None

    i0 = pl.program_id(2) * q_tile           # first global query row of the tile
    # Band of the zero-padded per-head rel-emb table used by this q-tile.
    base = kv_len - q_tile - i0
    if q_tile % 8 == 0:
        base = pl.multiple_of(base, 8)       # valid: kv_len % q_tile == 0 (asserted)

    q = q_ref[0, 0].astype(jnp.float32) * scale          # (Tq, d)
    u = u_ref[0].astype(jnp.float32)                     # (1, d)
    vb = vb_ref[0].astype(jnp.float32)                   # (1, d)
    k = k_ref[0, 0]                                      # (K, d)
    v = v_ref[0, 0]                                      # (K, d)
    r_band = r_ref[0, pl.ds(base, band_w), :]            # (W, d)

    qu = q + u
    qv = q + vb
    if mxu_dtype is not None:                # optional bf16 MXU operands (v6e/v7x)
        qu = qu.astype(mxu_dtype)
        qv = qv.astype(mxu_dtype)
        k = k.astype(mxu_dtype)
        r_band = r_band.astype(mxu_dtype)
        v_op = v.astype(mxu_dtype)
    else:
        qu = qu.astype(k.dtype)
        qv = qv.astype(r_band.dtype)
        v_op = v

    dn = (((1,), (1,)), ((), ()))            # contract last dims (implicit k^T)
    ac = lax.dot_general(qu, k, dn,
                         preferred_element_type=jnp.float32)       # (Tq, K)
    bd_band = lax.dot_general(qv, r_band, dn,
                              preferred_element_type=jnp.float32)  # (Tq, W)

    # rel_shift (Transformer-XL): bd[ti, j] = bd_band[ti, j + q_tile - 1 - ti].
    # Single strided XLU rotation, per-row roll amount = 1 + ti (all in
    # [1, q_tile], no negative / >= W edge cases).  Used columns never read
    # wrapped data: the source index j + q_tile - 1 - ti <= kv_len + q_tile - 2
    # < W.  Out-of-range relative positions hit the zero padding of r and are
    # masked by the causal bias anyway.
    rolled = pltpu.roll(bd_band, 1, 1, stride=1, stride_axis=0)
    bd = rolled[:, q_tile:q_tile + kv_len]                         # (Tq, K)

    if has_bias:
        mask_add = bias_ref[0, 0].astype(jnp.float32)
    elif causal:
        rows = lax.broadcasted_iota(jnp.int32, (q_tile, kv_len), 0)
        cols = lax.broadcasted_iota(jnp.int32, (q_tile, kv_len), 1)
        mask_add = jnp.where(cols > rows + i0,
                             jnp.float32(-1e9), jnp.float32(0.0))
    else:
        # TODO(synk): fully unmasked path differs from torch's rel_shift wrap
        #             semantics in the (masked-in-practice) j > i region.
        mask_add = jnp.float32(0.0)

    logits = ac + bd + mask_add
    m = jnp.max(logits, axis=-1, keepdims=True)
    e = jnp.exp(logits - m)
    denom = jnp.sum(e, axis=-1, keepdims=True)
    pv = jnp.dot(e.astype(v_op.dtype), v_op,
                 preferred_element_type=jnp.float32)               # (Tq, d)
    inv = pl.reciprocal(denom, approx=True)
    inv = inv * (2.0 - denom * inv)          # one Newton step -> f32 accuracy
    o_ref[0, 0] = (pv * inv).astype(o_ref.dtype)                   # full block store


def rel_attention(qh, kh, vh, r, pos_bias_u, pos_bias_v, *, bias=None,
                  causal=True, q_tile_max=128, mxu_dtype=None):
    """Fused relative-position self-attention.

    qh, kh, vh: (B, N, L, d) split-heads; r: (R, H); pos_bias_u/v: (N, d).
    bias (optional): additive logits bias of shape (1, 1, L, L); when None and
    causal=True the causal mask is generated in-kernel (no HBM bias traffic).
    Returns (N, B, L, d) per-head context (consumed by output_projection).
    """
    B, N, L, d = qh.shape
    Kl = kh.shape[2]
    R = r.shape[0]
    assert Kl == L and R == Kl, "self-attention path requires q_len == k_len == R"
    H = N * d
    scale = float(d) ** -0.5

    q_tile = _tile(L, q_tile_max, 8)
    band_w = _round_up(Kl + q_tile, 128)     # lane-aligned rolled band width
    # The first q-tile's band reaches row (Kl - q_tile) + band_w - 1, so r is
    # zero-padded up to p_rows (rows >= Kl only feed masked logits).
    p_rows = (Kl - q_tile) + band_w

    r_heads = jnp.transpose(r.reshape(Kl, N, d), (1, 0, 2))           # (N, Kl, d)
    r_pad = jnp.concatenate(
        [r_heads, jnp.zeros((N, p_rows - Kl, d), r.dtype)], axis=1)   # (N, P, d)
    u3 = pos_bias_u.reshape(N, 1, d)
    v3 = pos_bias_v.reshape(N, 1, d)

    in_specs = [
        pl.BlockSpec((1, 1, q_tile, d), lambda b, h, qi: (b, h, qi, 0)),  # q
        pl.BlockSpec((1, 1, Kl, d), lambda b, h, qi: (b, h, 0, 0)),       # k
        pl.BlockSpec((1, 1, Kl, d), lambda b, h, qi: (b, h, 0, 0)),       # v
        pl.BlockSpec((1, p_rows, d), lambda b, h, qi: (h, 0, 0)),         # r_pad
        pl.BlockSpec((1, 1, d), lambda b, h, qi: (h, 0, 0)),              # u
        pl.BlockSpec((1, 1, d), lambda b, h, qi: (h, 0, 0)),              # v bias
    ]
    inputs = [qh, kh, vh, r_pad, u3, v3]
    has_bias = bias is not None
    if has_bias:
        in_specs.append(
            pl.BlockSpec((1, 1, q_tile, Kl), lambda b, h, qi: (0, 0, qi, 0)))
        inputs.append(bias)

    # VMEM limit derived from actual block bytes (double buffered) + headroom,
    # clipped to stay inside v7x's 64 MiB physical VMEM.
    itemsize = 4
    blk_bytes = (q_tile * d + 2 * Kl * d + p_rows * d + 2 * d + q_tile * d
                 + (q_tile * Kl if has_bias else 0)) * itemsize
    vmem_limit = int(min(64 * 1024 * 1024,
                         max(32 * 1024 * 1024, 2 * blk_bytes + 8 * 1024 * 1024)))

    kernel = functools.partial(
        _rel_attn_kernel, scale=scale, q_tile=q_tile, kv_len=Kl, band_w=band_w,
        causal=causal, has_bias=has_bias, mxu_dtype=mxu_dtype)

    return pl.pallas_call(
        kernel,
        out_shape=jax.ShapeDtypeStruct((N, B, L, d), qh.dtype),
        grid=(B, N, L // q_tile),
        in_specs=in_specs,
        out_specs=pl.BlockSpec((1, 1, q_tile, d), lambda b, h, qi: (h, b, qi, 0)),
        compiler_params=pltpu.CompilerParams(
            dimension_semantics=("parallel", "parallel", "parallel"),
            vmem_limit_bytes=vmem_limit),
    )(*inputs)


# ------------------------------- forward glue -------------------------------- #

def prepare_params(params):
    """Hoisted parameter prep: pre-fuse the QKV projection weights once."""
    p = dict(params)
    if "w_qkv" not in p:
        p["w_qkv"] = jnp.concatenate([p["wq"], p["wk"], p["wv"]], axis=1)
        p["b_qkv"] = jnp.concatenate([p["bq"], p["bk"], p["bv"]])
    return p


def mhsa_forward(x, bias, pos_embs, pos_bias_u, pos_bias_v, params, num_heads,
                 *, causal=False, mxu_dtype=None):
    B, L, H = x.shape
    d = H // num_heads
    assert H % num_heads == 0
    assert len(pos_embs) == 1  # TODO(synk): multi-segment pos_embs (cache path)
    if "w_qkv" not in params:  # normally hoisted to prepare_params (done once)
        params = prepare_params(params)

    # Fused QKV projection: one tiled matmul, x read from HBM once.
    qkv = linear(x.reshape(B * L, H), params["w_qkv"], params["b_qkv"])  # (B*L,3H)
    # One fused XLA transpose to split-heads layout feeding per-head blocks.
    qkv_h = qkv.reshape(B, L, 3, num_heads, d).transpose(2, 0, 3, 1, 4)  # (3,B,N,L,d)
    qh, kh, vh = qkv_h[0], qkv_h[1], qkv_h[2]

    pe = jnp.transpose(pos_embs[0], (1, 0, 2)).reshape(-1, H)    # (R, H)
    r = linear(pe, params["wr"], params["br"])                   # (R, H)

    ctx = rel_attention(qh, kh, vh, r, pos_bias_u, pos_bias_v,
                        bias=bias, causal=causal, mxu_dtype=mxu_dtype)  # (N,B,L,d)

    out = output_projection(ctx.reshape(num_heads, B * L, d),
                            params["wo"], params["bo"])          # (B*L, H)
    return out.reshape(B, L, H)


# ------------------------ pure-JAX reference (for check) --------------------- #

def split_heads(x, heads):
    b, l, c = x.shape
    return jnp.transpose(x.reshape(b, l, heads, c // heads), (0, 2, 1, 3))


def combine_heads(x):
    b, h, l, c = x.shape
    return jnp.transpose(x, (0, 2, 1, 3)).reshape(b, l, h * c)


def rel_shift(x):
    """Exact replica of the PyTorch _rel_shift data movement. x: (B, N, L, R)."""
    B, N, L, R = x.shape
    y = jnp.transpose(x, (2, 3, 0, 1))
    zero_pad = jnp.zeros((L, 1, B, N), dtype=x.dtype)
    y = jnp.concatenate([zero_pad, y], axis=1)
    y = y.reshape(R + 1, L, B, N)
    y = y[1:].reshape(L, R, B, N)
    return jnp.transpose(y, (2, 3, 0, 1))


def positional_embedding(pos_seq, d_model):
    inv_freq = 1.0 / (10000.0 ** (jnp.arange(0.0, d_model, 2.0) / d_model))
    sinusoid = jnp.einsum("bi,j->ibj", pos_seq, inv_freq)
    return jnp.concatenate([jnp.sin(sinusoid), jnp.cos(sinusoid)], axis=-1)


def mhsa_reference(x, bias, pos_embs, pos_bias_u, pos_bias_v, params, num_heads):
    B, L, H = x.shape
    d = H // num_heads
    aff = lambda t, w, b: t @ w + b
    q = aff(x, params["wq"], params["bq"])
    k = aff(x, params["wk"], params["bk"])
    v = aff(x, params["wv"], params["bv"])
    rs = [aff(jnp.transpose(pe, (1, 0, 2)), params["wr"], params["br"])
          for pe in pos_embs]
    qh, kh, vh = (split_heads(t, num_heads) for t in (q, k, v))
    rh = jnp.concatenate([split_heads(r, num_heads) for r in rs], axis=0)
    qh = qh * d ** (-0.5)
    quh = qh + pos_bias_u[:, None, :]
    qvh = qh + pos_bias_v[:, None, :]
    AC = jnp.matmul(quh, jnp.swapaxes(kh, -1, -2)) + bias
    BD = jnp.matmul(qvh, jnp.swapaxes(rh, -1, -2))
    BD = rel_shift(BD)
    w = jax.nn.softmax(AC + BD, axis=-1)
    xo = jnp.matmul(w, vh)
    return aff(combine_heads(xo), params["wo"], params["bo"])


# ---------------------------------- main -------------------------------------- #

if __name__ == "__main__":
    B, L, H, NH = 2, 8, 32, 4
    d = H // NH

    key = jax.random.PRNGKey(0)
    keys = jax.random.split(key, 8)
    x = jax.random.normal(keys[0], (B, L, H), jnp.float32)

    def xavier(k, shape, gain):
        bound = gain * float(np.sqrt(6.0 / (shape[0] + shape[1])))
        return jax.random.uniform(k, shape, jnp.float32, -bound, bound)

    g = 2.0 ** (-0.5)
    params = {
        "wq": xavier(keys[1], (H, H), g), "bq": jnp.zeros((H,), jnp.float32),
        "wk": xavier(keys[2], (H, H), g), "bk": jnp.zeros((H,), jnp.float32),
        "wv": xavier(keys[3], (H, H), g), "bv": jnp.zeros((H,), jnp.float32),
        "wr": xavier(keys[4], (H, H), g), "br": jnp.zeros((H,), jnp.float32),
        "wo": xavier(keys[5], (H, H), 1.0), "bo": jnp.zeros((H,), jnp.float32),
    }
    pos_bias_u = 0.02 * jax.random.normal(keys[6], (NH, d), jnp.float32)
    pos_bias_v = 0.02 * jax.random.normal(keys[7], (NH, d), jnp.float32)

    # Relative positions from far to near (Transformer-XL convention), R == k_len.
    pos_seq = jnp.arange(L - 1, -1, -1, dtype=jnp.float32)[None, :]   # (1, L)
    pos_embs = [positional_embedding(pos_seq, H)]                      # [(L, 1, H)]

    # Causal attention bias (1, 1, L, L) used by the reference (and bias path).
    idx = jnp.arange(L)
    bias = ((idx[None, :] > idx[:, None]).astype(jnp.float32)
            * -1e9)[None, None, :, :]

    ref = mhsa_reference(x, bias, pos_embs, pos_bias_u, pos_bias_v, params, NH)

    # Pre-fuse QKV weights once (hoisted out of the per-call forward).
    fused_params = prepare_params(params)

    # Optimized path: causal mask generated in-kernel (no bias tensor DMA).
    out = mhsa_forward(x, None, pos_embs, pos_bias_u, pos_bias_v, fused_params,
                       NH, causal=True)
    out = jax.block_until_ready(out)
    np.testing.assert_allclose(np.asarray(out), np.asarray(ref),
                               rtol=2e-3, atol=2e-3)

    # Module-faithful path: explicit additive bias tensor.
    out_b = mhsa_forward(x, bias, pos_embs, pos_bias_u, pos_bias_v, fused_params,
                         NH)
    out_b = jax.block_until_ready(out_b)
    np.testing.assert_allclose(np.asarray(out_b), np.asarray(ref),
                               rtol=2e-3, atol=2e-3)

    print("KERNEL_OK")
</pallas_src>

<mosaic_0001>
module attributes {stable_mosaic.version = 11 : i64} {
  func.func @_linear_kernel(%arg0: i32, %arg1: i32, %arg2: i32, %arg3: memref<16x32xf32, #tpu.memory_space<vmem>>, %arg4: memref<32x96xf32, #tpu.memory_space<vmem>>, %arg5: memref<1x96xf32, #tpu.memory_space<vmem>>, %arg6: memref<16x96xf32, #tpu.memory_space<vmem>>, %arg7: memref<16x96xf32, #tpu.memory_space<vmem>>) attributes {dimension_semantics = [#tpu.dimension_semantics<parallel>, #tpu.dimension_semantics<parallel>, #tpu.dimension_semantics<arbitrary>], iteration_bounds = array<i64: 1, 1, 1>, scalar_prefetch = 0 : i64, scratch_operands = 1 : i64, tpu.core_type = #tpu.core_type<tc>, window_params = [{transform_indices = @transform_0, window_bounds = array<i64: 16, 32>}, {transform_indices = @transform_1, window_bounds = array<i64: 32, 96>}, {transform_indices = @transform_2, window_bounds = array<i64: 1, 96>}, {transform_indices = @transform_3, window_bounds = array<i64: 16, 96>}]} {
    %c0_i32 = arith.constant 0 : i32
    %0 = arith.cmpi eq, %arg2, %c0_i32 : i32
    %1 = arith.extui %0 : i1 to i32
    %c0_i32_0 = arith.constant 0 : i32
    %2 = arith.cmpi ne, %1, %c0_i32_0 : i32
    scf.if %2 {
      %cst_10 = arith.constant 0.000000e+00 : f32
      %12 = vector.broadcast %cst_10 : f32 to vector<16x96xf32>
      %c0_11 = arith.constant 0 : index
      %c0_12 = arith.constant 0 : index
      %13 = vector.load %arg7[%c0_11, %c0_12] : memref<16x96xf32, #tpu.memory_space<vmem>>, vector<16x96xf32>
      tpu.vector_store %arg7[%c0_11, %c0_12], %12 {strides = array<i32>} : memref<16x96xf32, #tpu.memory_space<vmem>>, vector<16x96xf32>,
    } else {
    }
    %c0 = arith.constant 0 : index
    %c0_1 = arith.constant 0 : index
    %3 = vector.load %arg7[%c0, %c0_1] : memref<16x96xf32, #tpu.memory_space<vmem>>, vector<16x96xf32>
    %c0_2 = arith.constant 0 : index
    %c0_3 = arith.constant 0 : index
    %4 = vector.load %arg3[%c0_2, %c0_3] : memref<16x32xf32, #tpu.memory_space<vmem>>, vector<16x32xf32>
    %c0_4 = arith.constant 0 : index
    %c0_5 = arith.constant 0 : index
    %5 = vector.load %arg4[%c0_4, %c0_5] : memref<32x96xf32, #tpu.memory_space<vmem>>, vector<32x96xf32>
    %cst = arith.constant dense<0.000000e+00> : vector<16x96xf32>
    %6 = tpu.matmul %4, %5, %cst {dimension_numbers = #tpu.dot_dimension_numbers<[1], [0], [0], [1], [0, 0, 1, 1], [], []>} : vector<16x32xf32>, vector<32x96xf32>, vector<16x96xf32> -> vector<16x96xf32>
    %7 = arith.addf %3, %6 : vector<16x96xf32>
    %c0_6 = arith.constant 0 : index
    %c0_7 = arith.constant 0 : index
    %8 = vector.load %arg7[%c0_6, %c0_7] : memref<16x96xf32, #tpu.memory_space<vmem>>, vector<16x96xf32>
    tpu.vector_store %arg7[%c0_6, %c0_7], %7 {strides = array<i32>} : memref<16x96xf32, #tpu.memory_space<vmem>>, vector<16x96xf32>,
    %c0_i32_8 = arith.constant 0 : i32
    %9 = arith.cmpi eq, %arg2, %c0_i32_8 : i32
    %10 = arith.extui %9 : i1 to i32
    %c0_i32_9 = arith.constant 0 : i32
    %11 = arith.cmpi ne, %10, %c0_i32_9 : i32
    scf.if %11 {
      %c0_10 = arith.constant 0 : index
      %c0_11 = arith.constant 0 : index
      %12 = vector.load %arg7[%c0_10, %c0_11] : memref<16x96xf32, #tpu.memory_space<vmem>>, vector<16x96xf32>
      %c0_12 = arith.constant 0 : index
      %c0_13 = arith.constant 0 : index
      %13 = vector.load %arg5[%c0_12, %c0_13] : memref<1x96xf32, #tpu.memory_space<vmem>>, vector<1x96xf32>
      %14 = vector.broadcast %13 : vector<1x96xf32> to vector<16x96xf32>
      %15 = arith.addf %12, %14 : vector<16x96xf32>
      %c0_14 = arith.constant 0 : index
      %c0_15 = arith.constant 0 : index
      %16 = vector.load %arg6[%c0_14, %c0_15] : memref<16x96xf32, #tpu.memory_space<vmem>>, vector<16x96xf32>
      tpu.vector_store %arg6[%c0_14, %c0_15], %15 {strides = array<i32>} : memref<16x96xf32, #tpu.memory_space<vmem>>, vector<16x96xf32>,
    } else {
    }
    return
  }
  func.func @transform_0(%arg0: i32, %arg1: i32, %arg2: i32) -> (i32, i32) {
    %c0_i32 = arith.constant 0 : i32
    return %arg0, %arg2 : i32, i32
  }
  func.func @transform_1(%arg0: i32, %arg1: i32, %arg2: i32) -> (i32, i32) {
    %c0_i32 = arith.constant 0 : i32
    return %arg2, %arg1 : i32, i32
  }
  func.func @transform_2(%arg0: i32, %arg1: i32, %arg2: i32) -> (i32, i32) {
    %c0_i32 = arith.constant 0 : i32
    %c0_i32_0 = arith.constant 0 : i32
    return %c0_i32, %arg1 : i32, i32
  }
  func.func @transform_3(%arg0: i32, %arg1: i32, %arg2: i32) -> (i32, i32) {
    %c0_i32 = arith.constant 0 : i32
    return %arg0, %arg1 : i32, i32
  }
}

</mosaic_0001>

<bundles_post_ra>
// kernel: tpu_custom_call.1
= control target key start
LH: loop header
LB: loop body
LE: loop exit
PB: predicated region body
PF: predicated region fallthrough
CT: control target
= control target key end

     0   :  { %8 = vsyncpa [#allocation4], 0  ;;  %s365_s0 = inlined_call_operand.hbm [shape: f32[16,32], index: 0, kind: input, shape index: {}]   ;;  %s366_s1 = inlined_call_operand.hbm [shape: f32[32,96], index: 1, kind: input, shape index: {}]   ;;  %s367_s2 = inlined_call_operand.vmem [shape: f32[1,96], index: 2, kind: input, shape index: {}]   ;;  %s368_s3 = inlined_call_operand.hbm [shape: f32[16,96], index: 3, kind: output, shape index: {}]  }
   0x1   :  { %9 = vsyncpa [#allocation7], 0 }
   0x2   :  { %10 = vsyncpa [#allocation5], 0  ;;  %s285_s12 = smov [#allocation3]   ;;  %s213_s16 = scalar_lea.hbm %s365_s0, 256 }
   0x3   :  { %s16_s13 = sshll.u32 %s285_s12, 4  ;;  %p214_p0 = scmp.ne.s32.totalorder %s365_s0, %s213_s16  ;;  %s17_s13 = int_to_ptr.vmem [resolvable:$true] %s16_s13 }
   0x4   :  { %p217_p1 = scmp.lt.u32.totalorder %s213_s16, %s365_s0 }
   0x6   :  { %p219_p2 = pnand %p217_p1, %p214_p0 }
   0x8   :  { %222 = shalt.err (!%p219_p2)
}
   0x9   :  { %s223_s21 = scalar_lea.vmem %s17_s13, 256  ;;  %p228_p4 = scmp.lt.s32.totalorder %s17_s13, %s17_s13 }
   0xa   :  { %p224_p3 = scmp.ne.s32.totalorder %s17_s13, %s223_s21  ;;  %p229_p5 = scmp.lt.s32.totalorder %s223_s21, %s223_s21 }
   0xc   :  { %p230_p6 = por %p229_p5, %p228_p4 }
   0xe   :  { %p231_p7 = pnand %p230_p6, %p224_p3 }
  0x10   :  { %234 = shalt.err (!%p231_p7)
}
  0x11   :  { %s286_s22 = smov 128   ;;  %s287_s23 = smov 8  }
  0x12   :  { %22 = dma.hbm_to_vmem [thread:$0]  %s365_s0, 256, %s17_s13, [#allocation4], %s286_s22, %s286_s22, %s287_s23  }
  0x13   :  { %s288_s26 = smov [#allocation6]   ;;  %s235_s30 = scalar_lea.hbm %s366_s1, 512 }
  0x14   :  { %s28_s27 = sshll.u32 %s288_s26, 4  ;;  %p236_p8 = scmp.ne.s32.totalorder %s366_s1, %s235_s30  ;;  %s29_s27 = int_to_ptr.vmem [resolvable:$true] %s28_s27 }
  0x15   :  { %p239_p9 = scmp.lt.u32.totalorder %s235_s30, %s366_s1 }
  0x17   :  { %p241_p10 = pnand %p239_p9, %p236_p8 }
  0x19   :  { %244 = shalt.err (!%p241_p10)
}
  0x1a   :  { %s245_s8 = scalar_lea.vmem %s29_s27, 512  ;;  %p250_p12 = scmp.lt.s32.totalorder %s29_s27, %s29_s27 }
  0x1b   :  { %p246_p11 = scmp.ne.s32.totalorder %s29_s27, %s245_s8  ;;  %p251_p13 = scmp.lt.s32.totalorder %s245_s8, %s245_s8 }
  0x1d   :  { %p252_p0 = por %p251_p13, %p250_p12 }
  0x1f   :  { %p253_p1 = pnand %p252_p0, %p246_p11 }
  0x21   :  { %256 = shalt.err (!%p253_p1)
}
  0x22   :  { %34 = dma.hbm_to_vmem [thread:$0]  %s366_s1, 512, %s29_s27, [#allocation7], %s286_s22, %s286_s22, %s287_s23  }
  0x23   :  { %279 = dma.done.wait [#allocation4], 256  }
  0x24   :  { %280 = vsyncadd [#allocation4], 4294967040 }
  0x25   :  { %281 = dma.done.wait [#allocation7], 512  }
  0x26   :  { %282 = vsyncadd [#allocation7], 4294966784  ;;  %vm47_vm0 = vcmask 785408   ;;  %v289_v0 = vmov 0.0   ;;  %vm58_vm1 = vcmask 261120   ;;  %v54_v1 = vld [vmem:[#allocation6] sm:$0xff] }
  0x27   :  { %49 = vst.msk [vmem:[#allocation2 + $0x8] sm:$0xff] %vm47_vm0, %v289_v0  ;;  %48 = vst.msk [vmem:[#allocation2] sm:$0xff] %vm47_vm0, %v289_v0  ;;  %v55_v2 = vld [vmem:[#allocation6 + $0x8] sm:$0xff]  ;;  %v56_v3 = vld [vmem:[#allocation6 + $0x10] sm:$0xff]  ;;  %s290_s11 = smov [#allocation8]  }
  0x28   :  { %v199_v4 = vpack.c.bf16 %v55_v2, %v54_v1  ;;  %v57_v5 = vld [vmem:[#allocation6 + $0x18] sm:$0xff]  ;;  %v52_v6 = vld [vmem:[#allocation3] sm:$0xff]  ;;  %v181_v15 = vld [vmem:[%s367_s2] ss:$0 sm:$0xff]  ;;  %s166_s12 = sshll.u32 %s290_s11, 4  ;;  %s167_s12 = int_to_ptr.vmem [resolvable:$true] %s166_s12 }
  0x29   :  { %v203_v7 = vpack.c.bf16 %v57_v5, %v56_v3  ;;  %196 = vmatprep.mubr.msk.f32.mxu0 %vm58_vm1, %v52_v6  ;;  %v53_v8 = vld [vmem:[#allocation3 + $0x8] sm:$0xff]  ;;  %s257_s13 = scalar_lea.vmem %s167_s12, 256  ;;  %p262_p3 = scmp.lt.s32.totalorder %s167_s12, %s167_s12 }
  0x2a   :  { %200 = vmatprep.subr.bf16.mxu0 %v199_v4  ;;  %p258_p2 = scmp.ne.s32.totalorder %s167_s12, %s257_s13  ;;  %p263_p4 = scmp.lt.s32.totalorder %s257_s13, %s257_s13 }
  0x2b   :  { %202 = vmatpush3.bf16.msra.mxu0 %v199_v4 }
  0x2c   :  { %204 = vmatprep.subr.bf16.mxu0 %v203_v7  ;;  %p264_p5 = por %p263_p4, %p262_p3 }
  0x2e   :  { %v51_v9 = vld [vmem:[#allocation2 + $0x8] sm:$0xff]  ;;  %v50_v10 = vld [vmem:[#allocation2] sm:$0xff]  ;;  %p265_p6 = pnand %p264_p5, %p258_p2 }
  0x2f   :  { %206 = vmatpush3.bf16.msra.mxu0 %v203_v7 }
  0x32   :  { %197 = vmatmul.mubr.msk.f32.vlgmr.msra.gmra.mrb[0].mxu0 %vm58_vm1, %v53_v8 }
 0x105   :  { %v198_v11 = vpop.f32.mrb[0].mxu0 }
 0x106   :  { %v141_v12 = vadd.f32 %v198_v11, %v51_v9  ;;  %v131_v13 = vpop.f32.mrb[1].mxu0 }
 0x107   :  { %v140_v14 = vadd.f32 %v131_v13, %v50_v10 }
 0x108   :  { %144 = vst.msk [vmem:[#allocation2 + $0x8] sm:$0xff] %vm47_vm0, %v141_v12 }
 0x109   :  { %143 = vst.msk [vmem:[#allocation2] sm:$0xff] %vm47_vm0, %v140_v14 }
 0x10f   :  { %v149_v16 = vld [vmem:[#allocation2 + $0x8] sm:$0xff] }
 0x110   :  { %v148_v17 = vld [vmem:[#allocation2] sm:$0xff]  ;;  %v158_v18 = vadd.f32 %v181_v15, %v149_v16 }
 0x111   :  { %v157_v19 = vadd.f32 %v181_v15, %v148_v17 }
 0x112   :  { %160 = vst.msk [vmem:[#allocation8 + $0x8] sm:$0xff] %vm47_vm0, %v158_v18 }
 0x113   :  { %159 = vst.msk [vmem:[#allocation8] sm:$0xff] %vm47_vm0, %v157_v19 }
 0x114   :  { %268 = shalt.err (!%p265_p6)
}
 0x115   :  { %s269_s15 = scalar_lea.hbm %s368_s3, 256 }
 0x116   :  { %p270_p7 = scmp.ne.s32.totalorder %s368_s3, %s269_s15  ;;  %p273_p8 = scmp.lt.u32.totalorder %s269_s15, %s368_s3 }
 0x118   :  { %p275_p9 = pnand %p273_p8, %p270_p7 }
 0x11a   :  { %278 = shalt.err (!%p275_p9)
}
 0x11b   :  { %172 = dma.vmem_to_hbm [thread:$0]  %s167_s12, 256, %s368_s3, [#allocation5], %s286_s22, %s286_s22, %s287_s23  }
 0x11c   :  { %283 = dma.done.wait [#allocation5], 256  }
 0x11d   :  { %284 = vsyncadd [#allocation5], 4294967040 }
 0x11e   :  { %176 = vsyncpa [#allocation4], 1 }
 0x11f   :  { %177 = vsyncpa [#allocation7], 1 }
 0x120   :  { %178 = vsyncpa [#allocation5], 1 }

</bundles_post_ra>
